<compile_context>
chip_gen: v5e
topology: v5e:2x2
jax: 0.10.0
libtpu: 0.0.40
codegen_flags: <defaults>
</compile_context>

<pallas_src>
import functools

import jax
import jax.numpy as jnp
from jax.experimental import pallas as pl
from jax.experimental.pallas import tpu as pltpu


def _round_up(a, b):
    return ((a + b - 1) // b) * b


def _vmem_capacity_bytes():
    """Physical VMEM per core; conservative 64 MiB (v7x per-TC) fallback."""
    try:
        cap = int(pltpu.get_tpu_info().vmem_capacity_bytes)
        if cap > 0:
            return cap
    except Exception:
        pass
    return 64 * 2 ** 20


def _feedforward_kernel(x_ref, g_ref, beta_ref, w1_ref, b1_ref, w2_ref, b2_ref,
                        o_ref, xn_ref, acc_ref, *, eps):
    k = pl.program_id(1)

    # ---- once per row tile: LayerNorm over last dim, zero accumulator ----
    @pl.when(k == 0)
    def _():
        x = x_ref[...].astype(jnp.float32)                       # (TM, D)
        mean = jnp.mean(x, axis=-1, keepdims=True)
        xc = x - mean
        var = jnp.mean(xc * xc, axis=-1, keepdims=True)
        xn = xc * jax.lax.rsqrt(var + eps)
        xn = xn * g_ref[...].astype(jnp.float32) + beta_ref[...].astype(jnp.float32)
        xn_ref[...] = xn.astype(xn_ref.dtype)                    # stored in MXU dtype
        acc_ref[...] = jnp.zeros_like(acc_ref)

    # ---- Linear(dim -> hidden)  (current hidden tile) ----
    h = jnp.dot(xn_ref[...], w1_ref[...], preferred_element_type=jnp.float32)
    h = h + b1_ref[...].astype(jnp.float32)                      # (TM, TH)

    # ---- GELU (exact, erf-based: matches torch.nn.GELU default) ----
    h = 0.5 * h * (1.0 + jax.lax.erf(h * 0.7071067811865476))

    # Dropout(p=0.0) is the identity; nothing to do.

    # ---- Linear(hidden -> dim), accumulate over hidden tiles ----
    acc_ref[...] += jnp.dot(h.astype(w2_ref.dtype), w2_ref[...],
                            preferred_element_type=jnp.float32)

    # ---- finalize: add output bias and store ----
    @pl.when(k == pl.num_programs(1) - 1)
    def _():
        o_ref[...] = (acc_ref[...] + b2_ref[...].astype(jnp.float32)).astype(o_ref.dtype)


def feedforward(x, gamma, beta, w1, b1, w2, b2, *, eps=1e-5,
                compute_dtype=jnp.bfloat16, tile_m=None, tile_h=None):
    """x: (batch, seq, dim) -> (batch, seq, dim)."""
    batch, seq, dim = x.shape
    dim_w, hidden = w1.shape
    assert dim_w == dim
    n = batch * seq

    xb = jnp.dtype(x.dtype).itemsize
    cb = jnp.dtype(compute_dtype).itemsize

    # ---- VMEM budget (respects v7x's 64 MiB per-TC VMEM, with headroom) ----
    cap = _vmem_capacity_bytes()
    budget = max(24 * 2 ** 20, min(cap - 16 * 2 ** 20, 112 * 2 ** 20))

    def _footprint(tm, th):
        f = 2 * tm * dim * xb            # x tile (double-buffered)
        f += 2 * tm * dim * xb           # out tile
        f += 2 * dim * th * cb           # W1 tile
        f += 2 * th * dim * cb           # W2 tile
        f += 2 * (th + 3 * dim) * 4      # b1 / gamma / beta / b2
        f += tm * dim * cb               # xn scratch (compute dtype)
        f += tm * dim * 4                # f32 accumulator scratch
        f += 2 * tm * th * 4             # f32 hidden intermediate working set
        return f

    # ---- row (M) tiling: big tiles for arithmetic intensity, >=2 for v7x ----
    if tile_m is None:
        tile_m = 512
    tile_m = max(16, min(_round_up(int(tile_m), 16), _round_up(n, 16)))
    if n > 16 and _round_up(n, tile_m) // tile_m < 2:
        tile_m = max(16, _round_up((n + 1) // 2, 16))   # give both TCs a tile

    # ---- hidden (H) tiling: prefer weights fully resident in VMEM ----
    if tile_h is not None:
        tile_h = min(int(tile_h), hidden)
        if tile_h < hidden:
            assert tile_h % 128 == 0, "tile_h must be a multiple of 128 when tiling hidden"
    else:
        chosen = None
        for tm_c in (tile_m, 256, 128, 64):
            if tm_c > tile_m:
                continue
            for th_c in (hidden, 2048, 1024, 512, 256, 128):
                if th_c != hidden and (th_c >= hidden or th_c % 128 != 0):
                    continue
                if _footprint(tm_c, th_c) <= budget:
                    chosen = (tm_c, th_c)
                    break
            if chosen is not None:
                break
        if chosen is None:
            chosen = (64, min(hidden, 128))
        tile_m, tile_h = chosen

    n_pad = _round_up(n, tile_m)
    num_m = n_pad // tile_m

    resident = tile_h >= hidden
    if resident:
        tile_h = hidden
        hidden_pad = hidden
        num_h = 1
    else:
        hidden_pad = _round_up(hidden, tile_h)
        num_h = hidden_pad // tile_h

    # ---- prepare operands ----
    x2d = x.reshape(n, dim)
    if n_pad != n:
        x2d = jnp.pad(x2d, ((0, n_pad - n), (0, 0)))

    w1c = w1.astype(compute_dtype)
    w2c = w2.astype(compute_dtype)
    b1p = b1
    if hidden_pad != hidden:       # zero-pad is exact: gelu(0) = 0, 0 @ W2 = 0
        w1c = jnp.pad(w1c, ((0, 0), (0, hidden_pad - hidden)))
        w2c = jnp.pad(w2c, ((0, hidden_pad - hidden), (0, 0)))
        b1p = jnp.pad(b1, ((0, hidden_pad - hidden),))

    # Contiguous per-k W1 slabs; a free expand-dims when weights are resident.
    if num_h == 1:
        w1_3d = w1c.reshape(1, dim, hidden_pad)
    else:
        w1_3d = w1c.reshape(dim, num_h, tile_h).transpose(1, 0, 2)

    gamma2d = gamma.reshape(1, dim)
    beta2d = beta.reshape(1, dim)
    b1_2d = b1p.reshape(1, hidden_pad)
    b2_2d = b2.reshape(1, dim)

    # ---- VMEM limit: above the actual footprint, below physical VMEM ----
    foot = _footprint(tile_m, tile_h)
    vmem_limit = min(budget, max(32 * 2 ** 20, (foot * 3) // 2))
    vmem_limit = max(vmem_limit, foot + 2 * 2 ** 20)
    vmem_limit = int(min(vmem_limit, cap - 8 * 2 ** 20))

    # ---- cost estimate reflecting the actual schedule ----
    weight_passes = 1 if num_h == 1 else num_m
    flops = 4 * n_pad * dim * hidden_pad                 # two matmuls
    bytes_accessed = (2 * n_pad * dim * xb               # x read + out write
                      + weight_passes * 2 * dim * hidden_pad * cb
                      + (hidden_pad + 3 * dim) * 4)

    out2d = pl.pallas_call(
        functools.partial(_feedforward_kernel, eps=eps),
        out_shape=jax.ShapeDtypeStruct((n_pad, dim), x.dtype),
        grid_spec=pltpu.PrefetchScalarGridSpec(
            num_scalar_prefetch=0,
            grid=(num_m, num_h),
            in_specs=[
                pl.BlockSpec((tile_m, dim), lambda i, k: (i, 0)),         # x tile
                pl.BlockSpec((1, dim), lambda i, k: (0, 0)),              # gamma
                pl.BlockSpec((1, dim), lambda i, k: (0, 0)),              # beta
                pl.BlockSpec((None, dim, tile_h), lambda i, k: (k, 0, 0)),  # W1 slab
                pl.BlockSpec((1, tile_h), lambda i, k: (0, k)),           # b1 tile
                pl.BlockSpec((tile_h, dim), lambda i, k: (k, 0)),         # W2 tile
                pl.BlockSpec((1, dim), lambda i, k: (0, 0)),              # b2
            ],
            out_specs=pl.BlockSpec((tile_m, dim), lambda i, k: (i, 0)),
            scratch_shapes=[
                pltpu.VMEM((tile_m, dim), compute_dtype),  # LayerNorm output (MXU dtype)
                pltpu.VMEM((tile_m, dim), jnp.float32),    # fp32 accumulator
            ],
        ),
        compiler_params=pltpu.CompilerParams(
            dimension_semantics=("parallel", "arbitrary"),
            vmem_limit_bytes=vmem_limit,
        ),
        cost_estimate=pl.CostEstimate(
            flops=int(flops),
            transcendentals=int(n_pad * hidden_pad),
            bytes_accessed=int(bytes_accessed),
        ),
    )(x2d, gamma2d, beta2d, w1_3d, b1_2d, w2c, b2_2d)

    return out2d[:n].reshape(batch, seq, dim)


def _reference(x, gamma, beta, w1, b1, w2, b2, eps=1e-5):
    xf = x.astype(jnp.float32)
    mean = jnp.mean(xf, axis=-1, keepdims=True)
    var = jnp.mean((xf - mean) ** 2, axis=-1, keepdims=True)
    xn = (xf - mean) / jnp.sqrt(var + eps) * gamma + beta
    h = xn @ w1 + b1
    h = 0.5 * h * (1.0 + jax.lax.erf(h / jnp.sqrt(2.0)))
    return (h @ w2 + b2).astype(x.dtype)


def _make_params(key, dim, hidden):
    kw1, kb1, kw2, kb2 = jax.random.split(key, 4)
    gamma = jnp.ones((dim,), jnp.float32)
    beta = jnp.zeros((dim,), jnp.float32)
    w1 = jax.random.normal(kw1, (dim, hidden), jnp.float32) * 0.05
    b1 = jax.random.normal(kb1, (hidden,), jnp.float32) * 0.01
    w2 = jax.random.normal(kw2, (hidden, dim), jnp.float32) * 0.05
    b2 = jax.random.normal(kb2, (dim,), jnp.float32) * 0.01
    return gamma, beta, w1, b1, w2, b2


if __name__ == "__main__":
    key = jax.random.PRNGKey(0)
    k1, k2, k3, k4, k5, k6 = jax.random.split(key, 6)

    # --- Test 1: small module-implied shapes, f32 MXU path, resident weights ---
    batch, seq, dim, hidden = 2, 8, 32, 64
    x = jax.random.normal(k1, (batch, seq, dim), dtype=jnp.float32)
    params = _make_params(k2, dim, hidden)
    out = jax.block_until_ready(feedforward(x, *params, compute_dtype=jnp.float32))
    ref = _reference(x, *params)
    assert out.shape == (batch, seq, dim)
    assert jnp.allclose(out, ref, atol=1e-3, rtol=1e-3), "mismatch vs reference (test 1)"

    # --- Test 2: bf16 MXU path, forced hidden-dim streaming, ragged row pad ---
    batch, seq, dim, hidden = 2, 25, 128, 512      # n=50 -> padded, 2 row tiles
    x = jax.random.normal(k3, (batch, seq, dim), dtype=jnp.float32)
    params = _make_params(k4, dim, hidden)
    out = jax.block_until_ready(
        feedforward(x, *params, compute_dtype=jnp.bfloat16, tile_h=256))
    ref = _reference(x, *params)
    assert out.shape == (batch, seq, dim)
    assert jnp.allclose(out, ref, atol=2e-2, rtol=2e-2), "mismatch vs reference (test 2)"

    # --- Test 3: default auto-tiling (resident bf16 weights, >=2 row tiles) ---
    batch, seq, dim, hidden = 2, 16, 128, 512
    x = jax.random.normal(k5, (batch, seq, dim), dtype=jnp.float32)
    params = _make_params(k6, dim, hidden)
    out = jax.block_until_ready(feedforward(x, *params))
    ref = _reference(x, *params)
    assert out.shape == (batch, seq, dim)
    assert jnp.allclose(out, ref, atol=2e-2, rtol=2e-2), "mismatch vs reference (test 3)"

    print("KERNEL_OK")
</pallas_src>

<mosaic_0001>
module attributes {stable_mosaic.version = 11 : i64} {
  func.func @_feedforward_kernel(%arg0: i32, %arg1: i32, %arg2: memref<16x32xf32, #tpu.memory_space<vmem>>, %arg3: memref<1x32xf32, #tpu.memory_space<vmem>>, %arg4: memref<1x32xf32, #tpu.memory_space<vmem>>, %arg5: memref<1x32x64xf32, #tpu.memory_space<vmem>>, %arg6: memref<1x64xf32, #tpu.memory_space<vmem>>, %arg7: memref<64x32xf32, #tpu.memory_space<vmem>>, %arg8: memref<1x32xf32, #tpu.memory_space<vmem>>, %arg9: memref<16x32xf32, #tpu.memory_space<vmem>>, %arg10: memref<16x32xf32, #tpu.memory_space<vmem>>, %arg11: memref<16x32xf32, #tpu.memory_space<vmem>>) attributes {dimension_semantics = [#tpu.dimension_semantics<parallel>, #tpu.dimension_semantics<arbitrary>], iteration_bounds = array<i64: 1, 1>, scalar_prefetch = 0 : i64, scratch_operands = 2 : i64, tpu.core_type = #tpu.core_type<tc>, window_params = [{transform_indices = @transform_0, window_bounds = array<i64: 16, 32>}, {pipeline_mode = #tpu.pipeline_mode<synchronous>, transform_indices = @transform_1, window_bounds = array<i64: 1, 32>}, {pipeline_mode = #tpu.pipeline_mode<synchronous>, transform_indices = @transform_2, window_bounds = array<i64: 1, 32>}, {transform_indices = @transform_3, window_bounds = array<i64: 1, 32, 64>}, {transform_indices = @transform_4, window_bounds = array<i64: 1, 64>}, {transform_indices = @transform_5, window_bounds = array<i64: 64, 32>}, {pipeline_mode = #tpu.pipeline_mode<synchronous>, transform_indices = @transform_6, window_bounds = array<i64: 1, 32>}, {transform_indices = @transform_7, window_bounds = array<i64: 16, 32>}]} {
    %c0_i32 = arith.constant 0 : i32
    %0 = arith.cmpi eq, %arg1, %c0_i32 : i32
    %1 = arith.extui %0 : i1 to i32
    %c0_i32_0 = arith.constant 0 : i32
    %2 = arith.cmpi ne, %1, %c0_i32_0 : i32
    scf.if %2 {
      %c0_19 = arith.constant 0 : index
      %c0_20 = arith.constant 0 : index
      %26 = vector.load %arg2[%c0_19, %c0_20] : memref<16x32xf32, #tpu.memory_space<vmem>>, vector<16x32xf32>
      %cst_21 = arith.constant dense<0.000000e+00> : vector<16xf32>
      %27 = vector.multi_reduction <add>, %26, %cst_21 [1] : vector<16x32xf32> to vector<16xf32>
      %28 = vector.shape_cast %27 : vector<16xf32> to vector<16x1xf32>
      %cst_22 = arith.constant 3.200000e+01 : f32
      %29 = vector.broadcast %cst_22 : f32 to vector<16x1xf32>
      %30 = arith.divf %28, %29 : vector<16x1xf32>
      %31 = vector.broadcast %30 : vector<16x1xf32> to vector<16x32xf32>
      %32 = arith.subf %26, %31 : vector<16x32xf32>
      %33 = arith.mulf %32, %32 : vector<16x32xf32>
      %cst_23 = arith.constant dense<0.000000e+00> : vector<16xf32>
      %34 = vector.multi_reduction <add>, %33, %cst_23 [1] : vector<16x32xf32> to vector<16xf32>
      %35 = vector.shape_cast %34 : vector<16xf32> to vector<16x1xf32>
      %cst_24 = arith.constant 3.200000e+01 : f32
      %36 = vector.broadcast %cst_24 : f32 to vector<16x1xf32>
      %37 = arith.divf %35, %36 : vector<16x1xf32>
      %cst_25 = arith.constant 9.99999974E-6 : f32
      %38 = vector.broadcast %cst_25 : f32 to vector<16x1xf32>
      %39 = arith.addf %37, %38 : vector<16x1xf32>
      %40 = math.rsqrt %39 : vector<16x1xf32>
      %41 = vector.broadcast %40 : vector<16x1xf32> to vector<16x32xf32>
      %42 = arith.mulf %32, %41 : vector<16x32xf32>
      %c0_26 = arith.constant 0 : index
      %c0_27 = arith.constant 0 : index
      %43 = vector.load %arg3[%c0_26, %c0_27] : memref<1x32xf32, #tpu.memory_space<vmem>>, vector<1x32xf32>
      %44 = vector.broadcast %43 : vector<1x32xf32> to vector<16x32xf32>
      %45 = arith.mulf %42, %44 : vector<16x32xf32>
      %c0_28 = arith.constant 0 : index
      %c0_29 = arith.constant 0 : index
      %46 = vector.load %arg4[%c0_28, %c0_29] : memref<1x32xf32, #tpu.memory_space<vmem>>, vector<1x32xf32>
      %47 = vector.broadcast %46 : vector<1x32xf32> to vector<16x32xf32>
      %48 = arith.addf %45, %47 : vector<16x32xf32>
      %c0_30 = arith.constant 0 : index
      %c0_31 = arith.constant 0 : index
      %49 = vector.load %arg10[%c0_30, %c0_31] : memref<16x32xf32, #tpu.memory_space<vmem>>, vector<16x32xf32>
      tpu.vector_store %arg10[%c0_30, %c0_31], %48 {strides = array<i32>} : memref<16x32xf32, #tpu.memory_space<vmem>>, vector<16x32xf32>,
      %cst_32 = arith.constant 0.000000e+00 : f32
      %50 = vector.broadcast %cst_32 : f32 to vector<16x32xf32>
      %c0_33 = arith.constant 0 : index
      %c0_34 = arith.constant 0 : index
      %51 = vector.load %arg11[%c0_33, %c0_34] : memref<16x32xf32, #tpu.memory_space<vmem>>, vector<16x32xf32>
      tpu.vector_store %arg11[%c0_33, %c0_34], %50 {strides = array<i32>} : memref<16x32xf32, #tpu.memory_space<vmem>>, vector<16x32xf32>,
    } else {
    }
    %c0 = arith.constant 0 : index
    %c0_1 = arith.constant 0 : index
    %3 = vector.load %arg10[%c0, %c0_1] : memref<16x32xf32, #tpu.memory_space<vmem>>, vector<16x32xf32>
    %c0_2 = arith.constant 0 : index
    %c0_3 = arith.constant 0 : index
    %c0_4 = arith.constant 0 : index
    %4 = vector.load %arg5[%c0_2, %c0_3, %c0_4] : memref<1x32x64xf32, #tpu.memory_space<vmem>>, vector<1x32x64xf32>
    %5 = vector.shape_cast %4 : vector<1x32x64xf32> to vector<32x64xf32>
    %cst = arith.constant dense<0.000000e+00> : vector<16x64xf32>
    %6 = tpu.matmul %3, %5, %cst {dimension_numbers = #tpu.dot_dimension_numbers<[1], [0], [0], [1], [0, 0, 1, 1], [], []>} : vector<16x32xf32>, vector<32x64xf32>, vector<16x64xf32> -> vector<16x64xf32>
    %c0_5 = arith.constant 0 : index
    %c0_6 = arith.constant 0 : index
    %7 = vector.load %arg6[%c0_5, %c0_6] : memref<1x64xf32, #tpu.memory_space<vmem>>, vector<1x64xf32>
    %8 = vector.broadcast %7 : vector<1x64xf32> to vector<16x64xf32>
    %9 = arith.addf %6, %8 : vector<16x64xf32>
    %cst_7 = arith.constant 5.000000e-01 : f32
    %10 = vector.broadcast %cst_7 : f32 to vector<16x64xf32>
    %11 = arith.mulf %10, %9 : vector<16x64xf32>
    %cst_8 = arith.constant 0.707106769 : f32
    %12 = vector.broadcast %cst_8 : f32 to vector<16x64xf32>
    %13 = arith.mulf %9, %12 : vector<16x64xf32>
    %14 = math.erf %13 : vector<16x64xf32>
    %cst_9 = arith.constant 1.000000e+00 : f32
    %15 = vector.broadcast %cst_9 : f32 to vector<16x64xf32>
    %16 = arith.addf %15, %14 : vector<16x64xf32>
    %17 = arith.mulf %11, %16 : vector<16x64xf32>
    %c0_10 = arith.constant 0 : index
    %c0_11 = arith.constant 0 : index
    %18 = vector.load %arg11[%c0_10, %c0_11] : memref<16x32xf32, #tpu.memory_space<vmem>>, vector<16x32xf32>
    %c0_12 = arith.constant 0 : index
    %c0_13 = arith.constant 0 : index
    %19 = vector.load %arg7[%c0_12, %c0_13] : memref<64x32xf32, #tpu.memory_space<vmem>>, vector<64x32xf32>
    %cst_14 = arith.constant dense<0.000000e+00> : vector<16x32xf32>
    %20 = tpu.matmul %17, %19, %cst_14 {dimension_numbers = #tpu.dot_dimension_numbers<[1], [0], [0], [1], [0, 0, 1, 1], [], []>} : vector<16x64xf32>, vector<64x32xf32>, vector<16x32xf32> -> vector<16x32xf32>
    %21 = arith.addf %18, %20 : vector<16x32xf32>
    %c0_15 = arith.constant 0 : index
    %c0_16 = arith.constant 0 : index
    %22 = vector.load %arg11[%c0_15, %c0_16] : memref<16x32xf32, #tpu.memory_space<vmem>>, vector<16x32xf32>
    tpu.vector_store %arg11[%c0_15, %c0_16], %21 {strides = array<i32>} : memref<16x32xf32, #tpu.memory_space<vmem>>, vector<16x32xf32>,
    %c0_i32_17 = arith.constant 0 : i32
    %23 = arith.cmpi eq, %arg1, %c0_i32_17 : i32
    %24 = arith.extui %23 : i1 to i32
    %c0_i32_18 = arith.constant 0 : i32
    %25 = arith.cmpi ne, %24, %c0_i32_18 : i32
    scf.if %25 {
      %c0_19 = arith.constant 0 : index
      %c0_20 = arith.constant 0 : index
      %26 = vector.load %arg11[%c0_19, %c0_20] : memref<16x32xf32, #tpu.memory_space<vmem>>, vector<16x32xf32>
      %c0_21 = arith.constant 0 : index
      %c0_22 = arith.constant 0 : index
      %27 = vector.load %arg8[%c0_21, %c0_22] : memref<1x32xf32, #tpu.memory_space<vmem>>, vector<1x32xf32>
      %28 = vector.broadcast %27 : vector<1x32xf32> to vector<16x32xf32>
      %29 = arith.addf %26, %28 : vector<16x32xf32>
      %c0_23 = arith.constant 0 : index
      %c0_24 = arith.constant 0 : index
      %30 = vector.load %arg9[%c0_23, %c0_24] : memref<16x32xf32, #tpu.memory_space<vmem>>, vector<16x32xf32>
      tpu.vector_store %arg9[%c0_23, %c0_24], %29 {strides = array<i32>} : memref<16x32xf32, #tpu.memory_space<vmem>>, vector<16x32xf32>,
    } else {
    }
    return
  }
  func.func @transform_0(%arg0: i32, %arg1: i32) -> (i32, i32) {
    %c0_i32 = arith.constant 0 : i32
    %c0_i32_0 = arith.constant 0 : i32
    return %arg0, %c0_i32 : i32, i32
  }
  func.func @transform_1(%arg0: i32, %arg1: i32) -> (i32, i32) {
    %c0_i32 = arith.constant 0 : i32
    %c0_i32_0 = arith.constant 0 : i32
    %c0_i32_1 = arith.constant 0 : i32
    return %c0_i32, %c0_i32_0 : i32, i32
  }
  func.func @transform_2(%arg0: i32, %arg1: i32) -> (i32, i32) {
    %c0_i32 = arith.constant 0 : i32
    %c0_i32_0 = arith.constant 0 : i32
    %c0_i32_1 = arith.constant 0 : i32
    return %c0_i32, %c0_i32_0 : i32, i32
  }
  func.func @transform_3(%arg0: i32, %arg1: i32) -> (i32, i32, i32) {
    %c0_i32 = arith.constant 0 : i32
    %c0_i32_0 = arith.constant 0 : i32
    %c0_i32_1 = arith.constant 0 : i32
    return %arg1, %c0_i32, %c0_i32_0 : i32, i32, i32
  }
  func.func @transform_4(%arg0: i32, %arg1: i32) -> (i32, i32) {
    %c0_i32 = arith.constant 0 : i32
    %c0_i32_0 = arith.constant 0 : i32
    return %c0_i32, %arg1 : i32, i32
  }
  func.func @transform_5(%arg0: i32, %arg1: i32) -> (i32, i32) {
    %c0_i32 = arith.constant 0 : i32
    %c0_i32_0 = arith.constant 0 : i32
    return %arg1, %c0_i32 : i32, i32
  }
  func.func @transform_6(%arg0: i32, %arg1: i32) -> (i32, i32) {
    %c0_i32 = arith.constant 0 : i32
    %c0_i32_0 = arith.constant 0 : i32
    %c0_i32_1 = arith.constant 0 : i32
    return %c0_i32, %c0_i32_0 : i32, i32
  }
  func.func @transform_7(%arg0: i32, %arg1: i32) -> (i32, i32) {
    %c0_i32 = arith.constant 0 : i32
    %c0_i32_0 = arith.constant 0 : i32
    return %arg0, %c0_i32 : i32, i32
  }
}

</mosaic_0001>

<bundles_post_ra>
// kernel: tpu_custom_call.1
= control target key start
LH: loop header
LB: loop body
LE: loop exit
PB: predicated region body
PF: predicated region fallthrough
CT: control target
= control target key end

     0   :  { %vm33_vm0 = vcmask 261120   ;;  %s525_s0 = inlined_call_operand.vmem [shape: f32[16,32], index: 0, kind: input, shape index: {}]   ;;  %s526_s1 = inlined_call_operand.vmem [shape: f32[1,32], index: 1, kind: input, shape index: {}]   ;;  %s527_s2 = inlined_call_operand.vmem [shape: f32[1,32], index: 2, kind: input, shape index: {}]   ;;  %s528_s3 = inlined_call_operand.vmem [shape: f32[1,32,64], index: 3, kind: input, shape index: {}]   ;;  %s529_s4 = inlined_call_operand.vmem [shape: f32[1,64], index: 4, kind: input, shape index: {}]   ;;  %s530_s5 = inlined_call_operand.vmem [shape: f32[64,32], index: 5, kind: input, shape index: {}]   ;;  %s531_s6 = inlined_call_operand.vmem [shape: f32[1,32], index: 6, kind: input, shape index: {}]   ;;  %s532_s7 = inlined_call_operand.hbm [shape: f32[16,32], index: 7, kind: output, shape index: {}]  }
   0x1   :  { %v32_v0 = vld [vmem:[%s525_s0 + $0x8] sm:$0xff] }
   0x2   :  { %v37_v1 = vsel %vm33_vm0, %v32_v0, 0.0 }
   0x3   :  { %38 = vadd.xlane.f32.xlu0 %v37_v1 }
   0x4   :  { %12 = vsyncpa [#allocation5], 0  ;;  %v31_v2 = vld [vmem:[%s525_s0] sm:$0xff]  ;;  %v367_v4 = vmov 32.0   ;;  %v106_v21 = vld [vmem:[%s528_s3 + $0x18] sm:$0xff]  ;;  %s369_s30 = smov [#allocation4]  }
   0x5   :  { %v34_v3 = vsel %vm33_vm0, %v31_v2, 0.0  ;;  %331 = vrcp.f32 %v367_v4  ;;  %310 = vmatpush.msra.mxu3 %v106_v21  ;;  %130 = vmatpush.msra.mxu0 %v106_v21  ;;  %v105_v22 = vld [vmem:[%s528_s3 + $0x10] sm:$0xff]  ;;  %v104_v25 = vld [vmem:[%s528_s3 + $0x8] sm:$0xff]  ;;  %v103_v27 = vld [vmem:[%s528_s3] sm:$0xff]  ;;  %s290_s8 = sshll.u32 %s369_s30, 4  ;;  %s292_s11 = sshll.u32 %s532_s7, 4  ;;  %s291_s8 = int_to_ptr.vmem [resolvable:$true] %s290_s8  ;;  %s293_s11 = int_to_ptr.hbm [resolvable:$true] %s292_s11 }
   0x6   :  { %v327_v39 = vld [vmem:[%s526_s1] ss:$0 sm:$0xff]  ;;  %v238_v1 = vld [vmem:[%s530_s5 + $0x38] sm:$0xff]  ;;  %s370_s12 = smov 128   ;;  %s371_s13 = smov 8  }
   0x7   :  { %311 = vmatpush.msra.mxu3 %v105_v22  ;;  %131 = vmatpush.msra.mxu0 %v105_v22  ;;  %v328_v42 = vld [vmem:[%s527_s2] ss:$0 sm:$0xff]  ;;  %v233_v22 = vld [vmem:[%s530_s5 + $0x10] sm:$0xff] }
   0x8   :  { %v329_v55 = vld [vmem:[%s529_s4] ss:$0 sm:$0xff]  ;;  %314 = vmatpush.msra.mxu2 %v238_v1  ;;  %254 = vmatpush.msra.mxu1 %v238_v1 }
   0x9   :  { %312 = vmatpush.msra.mxu3 %v104_v25  ;;  %132 = vmatpush.msra.mxu0 %v104_v25  ;;  %v232_v25 = vld [vmem:[%s530_s5 + $0x8] sm:$0xff] }
   0xb   :  { %35 = vadd.xlane.f32.xlu0 %v34_v3  ;;  %v332_v5 = vpop.eup %331  ;;  %313 = vmatpush.msra.mxu3 %v103_v27 }
   0xc   :  { %v41_v6 = vmul.f32 32.0, %v332_v5  ;;  %vm45_vm1 = vweird.f32 %v332_v5  ;;  %133 = vmatpush.msra.mxu0 %v103_v27 }
   0xe   :  { %v42_v7 = vsub.f32 1.0, %v41_v6 }
  0x10   :  { %v43_v8 = vmul.f32 %v332_v5, %v42_v7 }
  0x12   :  { %v44_v9 = vadd.f32 %v332_v5, %v43_v8 }
  0x14   :  { %v46_v10 = vsel %vm45_vm1, %v332_v5, %v44_v9  ;;  %v237_v5 = vld [vmem:[%s530_s5 + $0x30] sm:$0xff]  ;;  %vm239_vm1 = vcmask 523264  }
  0x15   :  { %315 = vmatpush.msra.mxu2 %v237_v5  ;;  %255 = vmatpush.msra.mxu1 %v237_v5 }
  0x76   :  { %v39_v11 = vpop.xlane.xlu0 %38 }
  0x77   :  { %v48_v12 = vmul.f32 %v46_v10, %v39_v11 }
  0x79   :  { %v50_v13 = vsub.f32 %v32_v0, %v48_v12 }
  0x7b   :  { %v52_v14 = vmul.f32 %v50_v13, %v50_v13 }
  0x7d   :  { %v56_v15 = vsel %vm33_vm0, %v52_v14, 0.0 }
  0x7e   :  { %57 = vadd.xlane.f32.xlu1 %v56_v15  ;;  %v36_v16 = vpop.xlane.xlu0 %35  ;;  %v235_v15 = vld [vmem:[%s530_s5 + $0x20] sm:$0xff] }
  0x7f   :  { %v47_v17 = vmul.f32 %v46_v10, %v36_v16 }
  0x81   :  { %v49_v18 = vsub.f32 %v31_v2, %v47_v17 }
  0x83   :  { %v51_v19 = vmul.f32 %v49_v18, %v49_v18 }
  0x85   :  { %v53_v20 = vsel %vm33_vm0, %v51_v19, 0.0 }
  0x86   :  { %54 = vadd.xlane.f32.xlu1 %v53_v20  ;;  %v234_v20 = vld [vmem:[%s530_s5 + $0x18] sm:$0xff] }
  0xf1   :  { %v58_v23 = vpop.xlane.xlu1 %57 }
  0xf2   :  { %v60_v24 = vmul.f32 %v58_v23, %v46_v10 }
  0xf4   :  { %v62_v26 = vadd.f32 1e-05, %v60_v24 }
  0xf6   :  { %333 = vrsqrt.f32 %v62_v26  ;;  %vm79_vm3 = vweird.f32 %v62_v26 }
  0xf9   :  { %v55_v28 = vpop.xlane.xlu1 %54 }
  0xfa   :  { %v59_v29 = vmul.f32 %v55_v28, %v46_v10  ;;  %v236_v10 = vld [vmem:[%s530_s5 + $0x28] sm:$0xff] }
  0xfb   :  { %316 = vmatpush.msra.mxu2 %v236_v10  ;;  %256 = vmatpush.msra.mxu1 %v236_v10 }
  0xfc   :  { %v334_v30 = vpop.eup %333  ;;  %v61_v31 = vadd.f32 1e-05, %v59_v29  ;;  %v231_v29 = vld [vmem:[%s530_s5] sm:$0xff] }
  0xfd   :  { %v74_v32 = vmul.f32 %v334_v30, %v62_v26  ;;  %vm80_vm2 = vweird.f32 %v334_v30  ;;  %317 = vmatpush.msra.mxu2 %v235_v15  ;;  %257 = vmatpush.msra.mxu1 %v235_v15 }
  0xfe   :  { %335 = vrsqrt.f32 %v61_v31  ;;  %vm81_vm4 = vmor %vm79_vm3, %vm80_vm2  ;;  %vm69_vm6 = vweird.f32 %v61_v31 }
  0xff   :  { %v75_v33 = vmul.f32 %v334_v30, %v74_v32  ;;  %318 = vmatpush.msra.mxu2 %v234_v20  ;;  %258 = vmatpush.msra.mxu1 %v234_v20 }
 0x101   :  { %v76_v34 = vmul.f32 0.5, %v75_v33  ;;  %319 = vmatpush.msra.mxu2 %v233_v22  ;;  %259 = vmatpush.msra.mxu1 %v233_v22 }
 0x103   :  { %v77_v35 = vsub.f32 1.5, %v76_v34  ;;  %320 = vmatpush.msra.mxu2 %v232_v25  ;;  %260 = vmatpush.msra.mxu1 %v232_v25 }
 0x104   :  { %v336_v36 = vpop.eup %335 }
 0x105   :  { %v78_v37 = vmul.f32 %v334_v30, %v77_v35  ;;  %v64_v38 = vmul.f32 %v336_v36, %v61_v31  ;;  %vm70_vm5 = vweird.f32 %v336_v36  ;;  %321 = vmatpush.msra.mxu2 %v231_v29  ;;  %261 = vmatpush.msra.mxu1 %v231_v29 }
 0x106   :  { %vm71_vm7 = vmor %vm69_vm6, %vm70_vm5 }
 0x107   :  { %v82_v40 = vsel %vm81_vm4, %v334_v30, %v78_v37  ;;  %v65_v41 = vmul.f32 %v336_v36, %v64_v38 }
 0x108   :  { %v84_v43 = vmul.f32 %v82_v40, %v50_v13 }
 0x109   :  { %v66_v44 = vmul.f32 0.5, %v65_v41 }
 0x10a   :  { %v90_v45 = vmul.f32 %v327_v39, %v84_v43 }
 0x10b   :  { %v67_v46 = vsub.f32 1.5, %v66_v44 }
 0x10c   :  { %v96_v47 = vadd.f32 %v328_v42, %v90_v45 }
 0x10d   :  { %v68_v48 = vmul.f32 %v336_v36, %v67_v46 }
 0x10e   :  { %98 = vst.msk [vmem:[#allocation2 + $0x8] sm:$0xff] %vm33_vm0, %v96_v47 }
 0x10f   :  { %v72_v49 = vsel %vm71_vm7, %v336_v36, %v68_v48 }
 0x110   :  { %v83_v50 = vmul.f32 %v72_v49, %v49_v18 }
 0x112   :  { %v89_v51 = vmul.f32 %v327_v39, %v83_v50  ;;  %v368_v39 = vmov 0.0  }
 0x113   :  { %99 = vst.msk [vmem:[#allocation3] sm:$0xff] %vm33_vm0, %v368_v39 }
 0x114   :  { %v95_v52 = vadd.f32 %v328_v42, %v89_v51  ;;  %100 = vst.msk [vmem:[#allocation3 + $0x8] sm:$0xff] %vm33_vm0, %v368_v39 }
 0x115   :  { %v102_v53 = vld [vmem:[#allocation2 + $0x8] sm:$0xff] }
 0x116   :  { %97 = vst.msk [vmem:[#allocation2] sm:$0xff] %vm33_vm0, %v95_v52  ;;  %305 = vmatmul.msk.f32.vlgmr.msra.gmra.mxu3 %vm33_vm0, %v102_v53 }
 0x11a   :  { %v229_v22 = vld [vmem:[#allocation3] sm:$0xff] }
 0x11d   :  { %v101_v54 = vld [vmem:[#allocation2] sm:$0xff] }
 0x11e   :  { %304 = vmatmul.msk.f32.vlgmr.msra.gmra.mxu0 %vm33_vm0, %v101_v54 }
 0x199   :  { %v138_v56 = vpop.f32.mrf.mxu3 }
 0x19a   :  { %v447_v57 = vadd.f32 %v329_v55, %v138_v56 }
 0x19b   :  { %v135_v58 = vpop.f32.mrf.mxu0 }
 0x19c   :  { %v450_v59 = vmul.f32 0.70710677, %v447_v57  ;;  %v452_v60 = vadd.f32 %v329_v55, %v135_v58 }
 0x19e   :  { %v185_v61 = vmul.f32 %v450_v59, %v450_v59  ;;  %v457_v62 = vmul.f32 0.70710677, %v452_v60 }
 0x1a0   :  { %v459_v63 = vmin.f32 %v185_v61, 16.0  ;;  %v145_v0 = vmul.f32 %v457_v62, %v457_v62 }
 0x1a2   :  { %v187_v2 = vmul.f32 2.1237322e-06, %v459_v63  ;;  %v198_v3 = vmul.f32 3.8918573e-05, %v459_v63  ;;  %v468_v4 = vmin.f32 %v145_v0, 16.0 }
 0x1a4   :  { %v188_v6 = vadd.f32 0.00028619796, %v187_v2  ;;  %v199_v7 = vadd.f32 0.001143296, %v198_v3  ;;  %v147_v8 = vmul.f32 2.1237322e-06, %v468_v4 }
 0x1a5   :  { %v158_v9 = vmul.f32 3.8918573e-05, %v468_v4 }
 0x1a6   :  { %v189_v11 = vmul.f32 %v188_v6, %v459_v63  ;;  %v200_v12 = vmul.f32 %v199_v7, %v459_v63  ;;  %v148_v13 = vadd.f32 0.00028619796, %v147_v8 }
 0x1a7   :  { %v159_v14 = vadd.f32 0.001143296, %v158_v9 }
 0x1a8   :  { %v201_v16 = vadd.f32 0.014752088, %v200_v12  ;;  %v149_v17 = vmul.f32 %v148_v13, %v468_v4  ;;  %v190_v18 = vadd.f32 0.0036580483, %v189_v11 }
 0x1a9   :  { %v160_v19 = vmul.f32 %v159_v14, %v468_v4 }
 0x1aa   :  { %v202_v21 = vmul.f32 %v201_v16, %v459_v63  ;;  %v150_v23 = vadd.f32 0.0036580483, %v149_v17  ;;  %v191_v27 = vmul.f32 %v190_v18, %v459_v63  ;;  %v142_v16 = vmul.f32 0.5, %v447_v57  ;;  %v330_v57 = vld [vmem:[%s531_s6] ss:$0 sm:$0xff] }
 0x1ab   :  { %v161_v24 = vadd.f32 0.014752088, %v160_v19  ;;  %v141_v19 = vmul.f32 0.5, %v452_v60 }
 0x1ac   :  { %v203_v26 = vadd.f32 0.112945676, %v202_v21  ;;  %v151_v31 = vmul.f32 %v150_v23, %v468_v4  ;;  %v192_v34 = vadd.f32 0.05243302, %v191_v27 }
 0x1ad   :  { %v162_v28 = vmul.f32 %v161_v24, %v468_v4  ;;  %v230_v24 = vld [vmem:[#allocation3 + $0x8] sm:$0xff] }
 0x1ae   :  { %v204_v30 = vmul.f32 %v203_v26, %v459_v63  ;;  %v152_v37 = vadd.f32 0.05243302, %v151_v31  ;;  %v193_v41 = vmul.f32 %v192_v34, %v459_v63 }
 0x1af   :  { %v163_v32 = vadd.f32 0.112945676, %v162_v28 }
 0x1b0   :  { %v205_v33 = vadd.f32 0.4994258, %v204_v30  ;;  %v153_v43 = vmul.f32 %v152_v37, %v468_v4  ;;  %v194_v45 = vadd.f32 0.18741608, %v193_v41 }
 0x1b1   :  { %v164_v35 = vmul.f32 %v163_v32, %v468_v4 }
 0x1b2   :  { %v206_v36 = vmul.f32 %v205_v33, %v459_v63  ;;  %v154_v46 = vadd.f32 0.18741608, %v153_v43  ;;  %v195_v48 = vmul.f32 %v194_v45, %v459_v63 }
 0x1b3   :  { %v165_v38 = vadd.f32 0.4994258, %v164_v35 }
 0x1b4   :  { %v207_v40 = vadd.f32 1.0, %v206_v36  ;;  %v155_v52 = vmul.f32 %v154_v46, %v468_v4  ;;  %v196_v55 = vadd.f32 1.1283791, %v195_v48 }
 0x1b5   :  { %v166_v42 = vmul.f32 %v165_v38, %v468_v4 }
 0x1b6   :  { %337 = vrcp.f32 %v207_v40  ;;  %v219_v53 = vand.u32 2147483648, %v207_v40  ;;  %v217_v58 = vand.u32 2147483647, %v207_v40  ;;  %vm213_vm9 = vweird.f32 %v207_v40 }
 0x1b7   :  { %v167_v44 = vadd.f32 1.0, %v166_v42  ;;  %v156_v1 = vadd.f32 1.1283791, %v155_v52  ;;  %v197_v6 = vmul.f32 %v196_v55, %v450_v59 }
 0x1b8   :  { %v220_v3 = vor.u32 1.1754944e-38, %v219_v53  ;;  %vm218_vm12 = vcmp.eq.f32.partialorder %v217_v58, 8.507059e+37 }
 0x1b9   :  { %339 = vrcp.f32 %v167_v44  ;;  %v179_v2 = vand.u32 2147483648, %v167_v44  ;;  %v177_v63 = vand.u32 2147483647, %v167_v44  ;;  %vm173_vm13 = vweird.f32 %v167_v44 }
 0x1ba   :  { %v157_v11 = vmul.f32 %v156_v1, %v457_v62 }
 0x1bb   :  { %v180_v10 = vor.u32 1.1754944e-38, %v179_v2  ;;  %vm178_vm15 = vcmp.eq.f32.partialorder %v177_v63, 8.507059e+37 }
 0x1bc   :  { %v338_v47 = vpop.eup %337 }
 0x1bd   :  { %v209_v49 = vmul.f32 %v338_v47, %v207_v40  ;;  %vm214_vm8 = vweird.f32 %v338_v47 }
 0x1be   :  { %vm215_vm10 = vmor %vm213_vm9, %vm214_vm8 }
 0x1bf   :  { %v340_v50 = vpop.eup %339  ;;  %v210_v51 = vsub.f32 1.0, %v209_v49 }
 0x1c0   :  { %v169_v54 = vmul.f32 %v340_v50, %v167_v44  ;;  %vm174_vm11 = vweird.f32 %v340_v50 }
 0x1c1   :  { %v211_v56 = vmul.f32 %v338_v47, %v210_v51  ;;  %vm175_vm14 = vmor %vm173_vm13, %vm174_vm11 }
 0x1c2   :  { %v170_v61 = vsub.f32 1.0, %v169_v54 }
 0x1c3   :  { %v212_v0 = vadd.f32 %v338_v47, %v211_v56 }
 0x1c4   :  { %v171_v5 = vmul.f32 %v340_v50, %v170_v61 }
 0x1c5   :  { %v216_v7 = vsel %vm215_vm10, %v338_v47, %v212_v0 }
 0x1c6   :  { %v221_v4 = vsel %vm218_vm12, %v220_v3, %v216_v7  ;;  %v172_v8 = vadd.f32 %v340_v50, %v171_v5 }
 0x1c7   :  { %v222_v9 = vmul.f32 %v221_v4, %v197_v6 }
 0x1c8   :  { %v176_v12 = vsel %vm175_vm14, %v340_v50, %v172_v8 }
 0x1c9   :  { %v181_v13 = vsel %vm178_vm15, %v180_v10, %v176_v12  ;;  %v307_v14 = vclamps-f32 %v222_v9, 1.0 }
 0x1ca   :  { %v182_v15 = vmul.f32 %v181_v13, %v157_v11 }
 0x1cb   :  { %v226_v17 = vadd.f32 1.0, %v307_v14 }
 0x1cc   :  { %v306_v59 = vclamps-f32 %v182_v15, 1.0 }
 0x1cd   :  { %v228_v18 = vmul.f32 %v226_v17, %v142_v16 }
 0x1ce   :  { %v225_v20 = vadd.f32 1.0, %v306_v59 }
 0x1cf   :  { %309 = vmatmul.msk.f32.vlgmr.msra.gmra.mxu2 %vm239_vm1, %v228_v18 }
 0x1d0   :  { %v227_v21 = vmul.f32 %v225_v20, %v141_v19 }
 0x1d2   :  { %308 = vmatmul.msk.f32.vlgmr.msra.gmra.mxu1 %vm239_vm1, %v227_v21 }
 0x24f   :  { %v263_v23 = vpop.f32.mrf.mxu1 }
 0x250   :  { %v269_v62 = vadd.f32 %v263_v23, %v229_v22 }
 0x252   :  { %271 = vst.msk [vmem:[#allocation3] sm:$0xff] %vm33_vm0, %v269_v62  ;;  %v266_v25 = vpop.f32.mrf.mxu2 }
 0x253   :  { %v270_v26 = vadd.f32 %v266_v25, %v230_v24 }
 0x255   :  { %272 = vst.msk [vmem:[#allocation3 + $0x8] sm:$0xff] %vm33_vm0, %v270_v26 }
 0x259   :  { %v276_v27 = vld [vmem:[#allocation3] sm:$0xff] }
 0x25a   :  { %v282_v60 = vadd.f32 %v330_v57, %v276_v27 }
 0x25c   :  { %v277_v28 = vld [vmem:[#allocation3 + $0x8] sm:$0xff]  ;;  %284 = vst.msk [vmem:[#allocation4] sm:$0xff] %vm33_vm0, %v282_v60 }
 0x25d   :  { %v283_v29 = vadd.f32 %v330_v57, %v277_v28 }
 0x25f   :  { %285 = vst.msk [vmem:[#allocation4 + $0x8] sm:$0xff] %vm33_vm0, %v283_v29 }
 0x260   :  { %298 = dma.vmem_to_hbm [thread:$0]  %s291_s8, 256, %s293_s11, [#allocation5], %s370_s12, %s370_s12, %s371_s13  }
 0x261   :  { %365 = dma.done.wait [#allocation5], 256  }
 0x262   :  { %366 = vsyncadd [#allocation5], 4294967040 }
 0x263   :  { %303 = vsyncpa [#allocation5], 1 }

</bundles_post_ra>
